<compile_context>
chip_gen: v6e
topology: v6e:2x2x1
jax: 0.10.0
libtpu: 0.0.40
codegen_flags: <defaults>
</compile_context>

<pallas_src>
import functools

import jax
import jax.numpy as jnp
from jax.experimental import pallas as pl
from jax.experimental.pallas import tpu as pltpu


def _round_up(x, m):
    return ((x + m - 1) // m) * m


# ------------------------- fused Pallas kernel -------------------------

def fused_decoder_kernel(
    x_ref, enc_ref, tmask_ref, smask_ref,
    w_tall_ref, w_wide_ref, b_d_ref, b_wide_ref,
    out_ref, *, B, T, S, D, scale,
):
    inv_scale = 1.0 / scale
    wide = w_wide_ref.shape[1]

    def mm(a, w_bf16):
        # bf16 operands into the MXU, f32 accumulation.
        return jnp.dot(a.astype(jnp.bfloat16), w_bf16,
                       preferred_element_type=jnp.float32)

    def w_att(i):
        # i-th [D, D] projection matrix (q1,k1,v1,o1,q2,k2,v2,o2); static,
        # 32-row-aligned slice of the packed bf16 slab -> free view.
        return w_tall_ref[i * D:(i + 1) * D, :]

    def bias(i):
        # [1, D] bias / LayerNorm row from the packed f32 slab.
        return b_d_ref[i:i + 1, :]

    def layernorm(v, ln_idx, eps=1e-5):
        g = bias(9 + 2 * ln_idx)
        b = bias(10 + 2 * ln_idx)
        mu = jnp.mean(v, axis=-1, keepdims=True)
        var = jnp.mean((v - mu) ** 2, axis=-1, keepdims=True)
        return (v - mu) * jax.lax.rsqrt(var + eps) * g + b

    def attention(q2d, k2d, v2d, mask, s_kv):
        # [rows, D] -> [B, seq, D]; batched scores / weighted sum via einsum.
        q = q2d.reshape(B, T, D)
        k = k2d.reshape(B, s_kv, D)
        v = v2d.reshape(B, s_kv, D)
        e = jnp.einsum('btd,bsd->bts', q.astype(jnp.bfloat16),
                       k.astype(jnp.bfloat16),
                       preferred_element_type=jnp.float32) * inv_scale
        e = jnp.where(mask > 0.0, e, -1e10)
        e = e - jnp.max(e, axis=-1, keepdims=True)
        p = jnp.exp(e)
        p = p * pl.reciprocal(jnp.sum(p, axis=-1, keepdims=True), approx=True)
        o = jnp.einsum('bts,bsd->btd', p.astype(jnp.bfloat16),
                       v.astype(jnp.bfloat16),
                       preferred_element_type=jnp.float32)
        return o.reshape(B * T, D)

    x = x_ref[...]          # [B*T, D]  (tok*scale + pos; dropout = identity)
    enc = enc_ref[...]      # [B*S, D]
    tmask = tmask_ref[...]  # [B, T, T]
    smask = smask_ref[...]  # [B, T, S]

    # ---- self-attention + residual + LayerNorm ----
    q1 = mm(x, w_att(0)) + bias(0)
    k1 = mm(x, w_att(1)) + bias(1)
    v1 = mm(x, w_att(2)) + bias(2)
    sa = attention(q1, k1, v1, tmask, T)
    sa = mm(sa, w_att(3)) + bias(3)
    x1 = layernorm(x + sa, 0)

    # ---- cross-attention (K/V from encoder states) + residual + LayerNorm ----
    q2 = mm(x1, w_att(4)) + bias(4)
    k2 = mm(enc, w_att(5)) + bias(5)
    v2 = mm(enc, w_att(6)) + bias(6)
    ca = attention(q2, k2, v2, smask, S)
    ca = mm(ca, w_att(7)) + bias(7)
    x2 = layernorm(x1 + ca, 1)

    # ---- position-wise FFN, computed in the 128-lane-padded hidden space
    #      (zero-padded columns/rows contribute exactly zero) ----
    w_f1 = w_wide_ref[0:D, :]                       # [D, wide]
    w_f2 = w_tall_ref[8 * D:8 * D + wide, :]        # [wide, D]
    h = jnp.maximum(mm(x2, w_f1) + b_wide_ref[0:1, :], 0.0)
    ff = mm(h, w_f2) + bias(8)
    x3 = layernorm(x2 + ff, 2)

    # ---- fc_out (lane-dense: vocab padded to a multiple of 128) ----
    w_out = w_wide_ref[D:2 * D, :]                  # [D, wide]
    out_ref[...] = mm(x3, w_out) + b_wide_ref[1:2, :]


# ------------------------- one-time weight packing -------------------------

def prepare_params(params):
    """Hoisted, one-time preprocessing: bf16 cast, pad, and pack into slabs."""
    tok = params["tok_embedding"]
    pos = params["pos_embedding"]
    D = tok.shape[1]
    # Only the last layer's output reaches fc_out (matches the reference loop,
    # which never feeds one layer's output into the next).
    lp = params["layers"][-1]
    PF = lp["w_f1"].shape[1]
    V = params["w_out"].shape[1]
    WIDE = max(_round_up(PF, 128), _round_up(V, 128))

    def bf(w):
        return w.astype(jnp.bfloat16)

    # [8*D + WIDE, D] bf16 slab: all D-column matmul operands.
    w_f2p = jnp.zeros((WIDE, D), jnp.float32).at[:PF].set(lp["w_f2"])
    w_tall = bf(jnp.concatenate(
        [lp["w_q1"], lp["w_k1"], lp["w_v1"], lp["w_o1"],
         lp["w_q2"], lp["w_k2"], lp["w_v2"], lp["w_o2"], w_f2p], axis=0))

    # [2*D, WIDE] bf16 slab: the two wide (128-lane padded) matmul operands.
    w_f1p = jnp.zeros((D, WIDE), jnp.float32).at[:, :PF].set(lp["w_f1"])
    w_outp = jnp.zeros((D, WIDE), jnp.float32).at[:, :V].set(params["w_out"])
    w_wide = bf(jnp.concatenate([w_f1p, w_outp], axis=0))

    # [16, D] f32 slab: all D-wide biases + LayerNorm params.
    rows = [lp["b_q1"], lp["b_k1"], lp["b_v1"], lp["b_o1"],
            lp["b_q2"], lp["b_k2"], lp["b_v2"], lp["b_o2"], lp["b_f2"],
            lp["ln_g"][0], lp["ln_b"][0], lp["ln_g"][1], lp["ln_b"][1],
            lp["ln_g"][2], lp["ln_b"][2], jnp.zeros((D,), jnp.float32)]
    b_d = jnp.stack(rows, axis=0)

    # [8, WIDE] f32 slab: row 0 = b_f1 (padded), row 1 = b_out (padded).
    b_wide = jnp.zeros((8, WIDE), jnp.float32)
    b_wide = b_wide.at[0, :PF].set(lp["b_f1"]).at[1, :V].set(params["b_out"])

    return {"tok_embedding": tok, "pos_embedding": pos,
            "w_tall": w_tall, "w_wide": w_wide,
            "b_d": b_d, "b_wide": b_wide}


# ------------------------- jitted forward -------------------------

def _decoder_forward(packed, trg, enc_src, trg_mask, src_mask, *, out_dim):
    B, T = trg.shape
    S = enc_src.shape[1]
    D = packed["tok_embedding"].shape[1]
    WIDE = packed["w_wide"].shape[1]
    scale = float(D) ** 0.5

    # Embedding gather + positional add are plain-JAX glue fused by XLA around
    # the single Pallas custom call (dropout = identity).
    x = (jnp.take(packed["tok_embedding"], trg, axis=0) * scale
         + packed["pos_embedding"][:T][None, :, :])
    x2d = x.reshape(B * T, D)
    enc2d = enc_src.reshape(B * S, D)

    kernel = functools.partial(fused_decoder_kernel,
                               B=B, T=T, S=S, D=D, scale=scale)

    vmem = pl.BlockSpec(memory_space=pltpu.MemorySpace.VMEM)
    out_pad = pl.pallas_call(
        kernel,
        out_shape=jax.ShapeDtypeStruct((B * T, WIDE), jnp.float32),
        in_specs=[vmem] * 8,
        out_specs=vmem,
    )(x2d, enc2d, trg_mask, src_mask,
      packed["w_tall"], packed["w_wide"], packed["b_d"], packed["b_wide"])

    return out_pad.reshape(B, T, WIDE)[..., :out_dim]


decoder_forward = jax.jit(_decoder_forward, static_argnames=("out_dim",))


# ------------------------- deterministic parameter init -------------------------

def init_params(key, output_dim, d_model, n_layers, pf_dim):
    keys = iter(jax.random.split(key, 4 + 20 * n_layers))

    def dense(shape, s=0.02):
        return jax.random.normal(next(keys), shape, jnp.float32) * s

    params = {
        "tok_embedding": dense((output_dim, d_model), 1.0),
        "pos_embedding": dense((output_dim, d_model), 1.0),
        "w_out": dense((d_model, output_dim)),
        "b_out": dense((output_dim,)),
        "layers": [],
    }
    for _ in range(n_layers):
        lp = {
            # self-attention projections
            "w_q1": dense((d_model, d_model)), "b_q1": dense((d_model,)),
            "w_k1": dense((d_model, d_model)), "b_k1": dense((d_model,)),
            "w_v1": dense((d_model, d_model)), "b_v1": dense((d_model,)),
            "w_o1": dense((d_model, d_model)), "b_o1": dense((d_model,)),
            # cross-attention projections
            "w_q2": dense((d_model, d_model)), "b_q2": dense((d_model,)),
            "w_k2": dense((d_model, d_model)), "b_k2": dense((d_model,)),
            "w_v2": dense((d_model, d_model)), "b_v2": dense((d_model,)),
            "w_o2": dense((d_model, d_model)), "b_o2": dense((d_model,)),
            # LayerNorm params (rows 0/1/2 = after SA / CA / FFN)
            "ln_g": jnp.ones((3, d_model), jnp.float32),
            "ln_b": jnp.zeros((3, d_model), jnp.float32),
            # position-wise FFN
            "w_f1": dense((d_model, pf_dim)), "b_f1": dense((pf_dim,)),
            "w_f2": dense((pf_dim, d_model)), "b_f2": dense((d_model,)),
        }
        params["layers"].append(lp)
    return params


# ------------------------- main -------------------------

if __name__ == "__main__":
    output_dim = 50   # target vocab size
    d_model = 32
    n_layers = 2
    pf_dim = 64
    B, T, S = 2, 8, 8

    key = jax.random.PRNGKey(0)
    kp, kt, ke = jax.random.split(key, 3)

    params = init_params(kp, output_dim, d_model, n_layers, pf_dim)
    packed = prepare_params(params)   # one-time cast / pad / pack (hoisted)

    trg = jax.random.randint(kt, (B, T), 0, output_dim, dtype=jnp.int32)
    enc_src = jax.random.normal(ke, (B, S, d_model), dtype=jnp.float32)

    # causal mask for decoder self-attention, all-ones source mask
    trg_mask = jnp.broadcast_to(jnp.tril(jnp.ones((T, T), jnp.float32)), (B, T, T))
    src_mask = jnp.ones((B, T, S), jnp.float32)

    out = decoder_forward(packed, trg, enc_src, trg_mask, src_mask,
                          out_dim=output_dim)
    out = jax.block_until_ready(out)
    assert out.shape == (B, T, output_dim), out.shape
    assert bool(jnp.all(jnp.isfinite(out)))
    print("KERNEL_OK")
</pallas_src>

<mosaic_0001>
module attributes {stable_mosaic.version = 11 : i64} {
  func.func @fused_decoder_kernel(%arg0: memref<16x32xf32, #tpu.memory_space<vmem>>, %arg1: memref<16x32xf32, #tpu.memory_space<vmem>>, %arg2: memref<2x8x8xf32, #tpu.memory_space<vmem>>, %arg3: memref<2x8x8xf32, #tpu.memory_space<vmem>>, %arg4: memref<384x32xbf16, #tpu.memory_space<vmem>>, %arg5: memref<64x128xbf16, #tpu.memory_space<vmem>>, %arg6: memref<16x32xf32, #tpu.memory_space<vmem>>, %arg7: memref<8x128xf32, #tpu.memory_space<vmem>>, %arg8: memref<16x128xf32, #tpu.memory_space<vmem>>) attributes {dimension_semantics = [], scalar_prefetch = 0 : i64, scratch_operands = 0 : i64, tpu.core_type = #tpu.core_type<tc>} {
    %c0 = arith.constant 0 : index
    %c0_0 = arith.constant 0 : index
    %0 = vector.load %arg0[%c0, %c0_0] : memref<16x32xf32, #tpu.memory_space<vmem>>, vector<16x32xf32>
    %c0_1 = arith.constant 0 : index
    %c0_2 = arith.constant 0 : index
    %1 = vector.load %arg1[%c0_1, %c0_2] : memref<16x32xf32, #tpu.memory_space<vmem>>, vector<16x32xf32>
    %c0_3 = arith.constant 0 : index
    %c0_4 = arith.constant 0 : index
    %c0_5 = arith.constant 0 : index
    %2 = vector.load %arg2[%c0_3, %c0_4, %c0_5] : memref<2x8x8xf32, #tpu.memory_space<vmem>>, vector<2x8x8xf32>
    %c0_6 = arith.constant 0 : index
    %c0_7 = arith.constant 0 : index
    %c0_8 = arith.constant 0 : index
    %3 = vector.load %arg3[%c0_6, %c0_7, %c0_8] : memref<2x8x8xf32, #tpu.memory_space<vmem>>, vector<2x8x8xf32>
    %c0_9 = arith.constant 0 : index
    %c0_10 = arith.constant 0 : index
    %4 = vector.load %arg4[%c0_9, %c0_10] : memref<384x32xbf16, #tpu.memory_space<vmem>>, vector<32x32xbf16>
    %5 = arith.truncf %0 : vector<16x32xf32> to vector<16x32xbf16>
    %cst = arith.constant dense<0.000000e+00> : vector<16x32xf32>
    %6 = tpu.matmul %5, %4, %cst {dimension_numbers = #tpu.dot_dimension_numbers<[1], [0], [0], [1], [0, 0, 1, 1], [], []>} : vector<16x32xbf16>, vector<32x32xbf16>, vector<16x32xf32> -> vector<16x32xf32>
    %c0_11 = arith.constant 0 : index
    %c0_12 = arith.constant 0 : index
    %7 = vector.load %arg6[%c0_11, %c0_12] : memref<16x32xf32, #tpu.memory_space<vmem>>, vector<1x32xf32>
    %8 = vector.broadcast %7 : vector<1x32xf32> to vector<16x32xf32>
    %9 = arith.addf %6, %8 : vector<16x32xf32>
    %c32 = arith.constant 32 : index
    %c0_13 = arith.constant 0 : index
    %10 = vector.load %arg4[%c32, %c0_13] : memref<384x32xbf16, #tpu.memory_space<vmem>>, vector<32x32xbf16>
    %11 = arith.truncf %0 : vector<16x32xf32> to vector<16x32xbf16>
    %cst_14 = arith.constant dense<0.000000e+00> : vector<16x32xf32>
    %12 = tpu.matmul %11, %10, %cst_14 {dimension_numbers = #tpu.dot_dimension_numbers<[1], [0], [0], [1], [0, 0, 1, 1], [], []>} : vector<16x32xbf16>, vector<32x32xbf16>, vector<16x32xf32> -> vector<16x32xf32>
    %c1 = arith.constant 1 : index
    %c0_15 = arith.constant 0 : index
    %13 = vector.load %arg6[%c1, %c0_15] : memref<16x32xf32, #tpu.memory_space<vmem>>, vector<1x32xf32>
    %14 = vector.broadcast %13 : vector<1x32xf32> to vector<16x32xf32>
    %15 = arith.addf %12, %14 : vector<16x32xf32>
    %c64 = arith.constant 64 : index
    %c0_16 = arith.constant 0 : index
    %16 = vector.load %arg4[%c64, %c0_16] : memref<384x32xbf16, #tpu.memory_space<vmem>>, vector<32x32xbf16>
    %17 = arith.truncf %0 : vector<16x32xf32> to vector<16x32xbf16>
    %cst_17 = arith.constant dense<0.000000e+00> : vector<16x32xf32>
    %18 = tpu.matmul %17, %16, %cst_17 {dimension_numbers = #tpu.dot_dimension_numbers<[1], [0], [0], [1], [0, 0, 1, 1], [], []>} : vector<16x32xbf16>, vector<32x32xbf16>, vector<16x32xf32> -> vector<16x32xf32>
    %c2 = arith.constant 2 : index
    %c0_18 = arith.constant 0 : index
    %19 = vector.load %arg6[%c2, %c0_18] : memref<16x32xf32, #tpu.memory_space<vmem>>, vector<1x32xf32>
    %20 = vector.broadcast %19 : vector<1x32xf32> to vector<16x32xf32>
    %21 = arith.addf %18, %20 : vector<16x32xf32>
    %22 = vector.shape_cast %9 : vector<16x32xf32> to vector<2x8x32xf32>
    %23 = vector.shape_cast %15 : vector<16x32xf32> to vector<2x8x32xf32>
    %24 = vector.shape_cast %21 : vector<16x32xf32> to vector<2x8x32xf32>
    %25 = arith.truncf %22 : vector<2x8x32xf32> to vector<2x8x32xbf16>
    %26 = arith.truncf %23 : vector<2x8x32xf32> to vector<2x8x32xbf16>
    "tpu.trace_start"() <{level = 10 : i32, message = "btd,bsd->bts"}> : () -> ()
    %cst_19 = arith.constant dense<0.000000e+00> : vector<2x8x8xf32>
    %27 = tpu.matmul %25, %26, %cst_19 {dimension_numbers = #tpu.dot_dimension_numbers<[2], [2], [1], [1], [0, 0, 0, 1, 1, 1], [0], [0]>} : vector<2x8x32xbf16>, vector<2x8x32xbf16>, vector<2x8x8xf32> -> vector<2x8x8xf32>
    "tpu.trace_stop"() : () -> ()
    %cst_20 = arith.constant 0.176776692 : f32
    %28 = vector.broadcast %cst_20 : f32 to vector<2x8x8xf32>
    %29 = arith.mulf %27, %28 : vector<2x8x8xf32>
    %cst_21 = arith.constant 0.000000e+00 : f32
    %30 = vector.broadcast %cst_21 : f32 to vector<2x8x8xf32>
    %31 = arith.cmpf ogt, %2, %30 : vector<2x8x8xf32>
    %cst_22 = arith.constant -1.000000e+10 : f32
    %32 = vector.broadcast %cst_22 : f32 to vector<2x8x8xf32>
    %33 = arith.select %31, %29, %32 : vector<2x8x8xi1>, vector<2x8x8xf32>
    %cst_23 = arith.constant dense<0xFF800000> : vector<2x8xf32>
    %34 = vector.multi_reduction <maximumf>, %33, %cst_23 [2] : vector<2x8x8xf32> to vector<2x8xf32>
    %35 = vector.shape_cast %34 : vector<2x8xf32> to vector<2x8x1xf32>
    %36 = vector.broadcast %35 : vector<2x8x1xf32> to vector<2x8x8xf32>
    %37 = arith.subf %33, %36 : vector<2x8x8xf32>
    %38 = math.exp %37 : vector<2x8x8xf32>
    %cst_24 = arith.constant dense<0.000000e+00> : vector<2x8xf32>
    %39 = vector.multi_reduction <add>, %38, %cst_24 [2] : vector<2x8x8xf32> to vector<2x8xf32>
    %40 = vector.shape_cast %39 : vector<2x8xf32> to vector<2x8x1xf32>
    %41 = tpu.reciprocal %40 {approx = true} : vector<2x8x1xf32> -> vector<2x8x1xf32>
    %42 = vector.broadcast %41 : vector<2x8x1xf32> to vector<2x8x8xf32>
    %43 = arith.mulf %38, %42 : vector<2x8x8xf32>
    %44 = arith.truncf %43 : vector<2x8x8xf32> to vector<2x8x8xbf16>
    %45 = arith.truncf %24 : vector<2x8x32xf32> to vector<2x8x32xbf16>
    "tpu.trace_start"() <{level = 10 : i32, message = "bts,bsd->btd"}> : () -> ()
    %cst_25 = arith.constant dense<0.000000e+00> : vector<2x8x32xf32>
    %46 = tpu.matmul %44, %45, %cst_25 {dimension_numbers = #tpu.dot_dimension_numbers<[2], [1], [1], [2], [0, 0, 0, 1, 1, 2], [0], [0]>} : vector<2x8x8xbf16>, vector<2x8x32xbf16>, vector<2x8x32xf32> -> vector<2x8x32xf32>
    "tpu.trace_stop"() : () -> ()
    %47 = vector.shape_cast %46 : vector<2x8x32xf32> to vector<16x32xf32>
    %c96 = arith.constant 96 : index
    %c0_26 = arith.constant 0 : index
    %48 = vector.load %arg4[%c96, %c0_26] : memref<384x32xbf16, #tpu.memory_space<vmem>>, vector<32x32xbf16>
    %49 = arith.truncf %47 : vector<16x32xf32> to vector<16x32xbf16>
    %cst_27 = arith.constant dense<0.000000e+00> : vector<16x32xf32>
    %50 = tpu.matmul %49, %48, %cst_27 {dimension_numbers = #tpu.dot_dimension_numbers<[1], [0], [0], [1], [0, 0, 1, 1], [], []>} : vector<16x32xbf16>, vector<32x32xbf16>, vector<16x32xf32> -> vector<16x32xf32>
    %c3 = arith.constant 3 : index
    %c0_28 = arith.constant 0 : index
    %51 = vector.load %arg6[%c3, %c0_28] : memref<16x32xf32, #tpu.memory_space<vmem>>, vector<1x32xf32>
    %52 = vector.broadcast %51 : vector<1x32xf32> to vector<16x32xf32>
    %53 = arith.addf %50, %52 : vector<16x32xf32>
    %54 = arith.addf %0, %53 : vector<16x32xf32>
    %c9 = arith.constant 9 : index
    %c0_29 = arith.constant 0 : index
    %55 = vector.load %arg6[%c9, %c0_29] : memref<16x32xf32, #tpu.memory_space<vmem>>, vector<1x32xf32>
    %c10 = arith.constant 10 : index
    %c0_30 = arith.constant 0 : index
    %56 = vector.load %arg6[%c10, %c0_30] : memref<16x32xf32, #tpu.memory_space<vmem>>, vector<1x32xf32>
    %cst_31 = arith.constant dense<0.000000e+00> : vector<16xf32>
    %57 = vector.multi_reduction <add>, %54, %cst_31 [1] : vector<16x32xf32> to vector<16xf32>
    %58 = vector.shape_cast %57 : vector<16xf32> to vector<16x1xf32>
    %cst_32 = arith.constant 3.200000e+01 : f32
    %59 = vector.broadcast %cst_32 : f32 to vector<16x1xf32>
    %60 = arith.divf %58, %59 : vector<16x1xf32>
    %61 = vector.broadcast %60 : vector<16x1xf32> to vector<16x32xf32>
    %62 = arith.subf %54, %61 : vector<16x32xf32>
    %63 = arith.mulf %62, %62 : vector<16x32xf32>
    %cst_33 = arith.constant dense<0.000000e+00> : vector<16xf32>
    %64 = vector.multi_reduction <add>, %63, %cst_33 [1] : vector<16x32xf32> to vector<16xf32>
    %65 = vector.shape_cast %64 : vector<16xf32> to vector<16x1xf32>
    %cst_34 = arith.constant 3.200000e+01 : f32
    %66 = vector.broadcast %cst_34 : f32 to vector<16x1xf32>
    %67 = arith.divf %65, %66 : vector<16x1xf32>
    %68 = vector.broadcast %60 : vector<16x1xf32> to vector<16x32xf32>
    %69 = arith.subf %54, %68 : vector<16x32xf32>
    %cst_35 = arith.constant 9.99999974E-6 : f32
    %70 = vector.broadcast %cst_35 : f32 to vector<16x1xf32>
    %71 = arith.addf %67, %70 : vector<16x1xf32>
    %72 = math.rsqrt %71 : vector<16x1xf32>
    %73 = vector.broadcast %72 : vector<16x1xf32> to vector<16x32xf32>
    %74 = arith.mulf %69, %73 : vector<16x32xf32>
    %75 = vector.broadcast %55 : vector<1x32xf32> to vector<16x32xf32>
    %76 = arith.mulf %74, %75 : vector<16x32xf32>
    %77 = vector.broadcast %56 : vector<1x32xf32> to vector<16x32xf32>
    %78 = arith.addf %76, %77 : vector<16x32xf32>
    %c128 = arith.constant 128 : index
    %c0_36 = arith.constant 0 : index
    %79 = vector.load %arg4[%c128, %c0_36] : memref<384x32xbf16, #tpu.memory_space<vmem>>, vector<32x32xbf16>
    %80 = arith.truncf %78 : vector<16x32xf32> to vector<16x32xbf16>
    %cst_37 = arith.constant dense<0.000000e+00> : vector<16x32xf32>
    %81 = tpu.matmul %80, %79, %cst_37 {dimension_numbers = #tpu.dot_dimension_numbers<[1], [0], [0], [1], [0, 0, 1, 1], [], []>} : vector<16x32xbf16>, vector<32x32xbf16>, vector<16x32xf32> -> vector<16x32xf32>
    %c4 = arith.constant 4 : index
    %c0_38 = arith.constant 0 : index
    %82 = vector.load %arg6[%c4, %c0_38] : memref<16x32xf32, #tpu.memory_space<vmem>>, vector<1x32xf32>
    %83 = vector.broadcast %82 : vector<1x32xf32> to vector<16x32xf32>
    %84 = arith.addf %81, %83 : vector<16x32xf32>
    %c160 = arith.constant 160 : index
    %c0_39 = arith.constant 0 : index
    %85 = vector.load %arg4[%c160, %c0_39] : memref<384x32xbf16, #tpu.memory_space<vmem>>, vector<32x32xbf16>
    %86 = arith.truncf %1 : vector<16x32xf32> to vector<16x32xbf16>
    %cst_40 = arith.constant dense<0.000000e+00> : vector<16x32xf32>
    %87 = tpu.matmul %86, %85, %cst_40 {dimension_numbers = #tpu.dot_dimension_numbers<[1], [0], [0], [1], [0, 0, 1, 1], [], []>} : vector<16x32xbf16>, vector<32x32xbf16>, vector<16x32xf32> -> vector<16x32xf32>
    %c5 = arith.constant 5 : index
    %c0_41 = arith.constant 0 : index
    %88 = vector.load %arg6[%c5, %c0_41] : memref<16x32xf32, #tpu.memory_space<vmem>>, vector<1x32xf32>
    %89 = vector.broadcast %88 : vector<1x32xf32> to vector<16x32xf32>
    %90 = arith.addf %87, %89 : vector<16x32xf32>
    %c192 = arith.constant 192 : index
    %c0_42 = arith.constant 0 : index
    %91 = vector.load %arg4[%c192, %c0_42] : memref<384x32xbf16, #tpu.memory_space<vmem>>, vector<32x32xbf16>
    %92 = arith.truncf %1 : vector<16x32xf32> to vector<16x32xbf16>
    %cst_43 = arith.constant dense<0.000000e+00> : vector<16x32xf32>
    %93 = tpu.matmul %92, %91, %cst_43 {dimension_numbers = #tpu.dot_dimension_numbers<[1], [0], [0], [1], [0, 0, 1, 1], [], []>} : vector<16x32xbf16>, vector<32x32xbf16>, vector<16x32xf32> -> vector<16x32xf32>
    %c6 = arith.constant 6 : index
    %c0_44 = arith.constant 0 : index
    %94 = vector.load %arg6[%c6, %c0_44] : memref<16x32xf32, #tpu.memory_space<vmem>>, vector<1x32xf32>
    %95 = vector.broadcast %94 : vector<1x32xf32> to vector<16x32xf32>
    %96 = arith.addf %93, %95 : vector<16x32xf32>
    %97 = vector.shape_cast %84 : vector<16x32xf32> to vector<2x8x32xf32>
    %98 = vector.shape_cast %90 : vector<16x32xf32> to vector<2x8x32xf32>
    %99 = vector.shape_cast %96 : vector<16x32xf32> to vector<2x8x32xf32>
    %100 = arith.truncf %97 : vector<2x8x32xf32> to vector<2x8x32xbf16>
    %101 = arith.truncf %98 : vector<2x8x32xf32> to vector<2x8x32xbf16>
    "tpu.trace_start"() <{level = 10 : i32, message = "btd,bsd->bts"}> : () -> ()
    %cst_45 = arith.constant dense<0.000000e+00> : vector<2x8x8xf32>
    %102 = tpu.matmul %100, %101, %cst_45 {dimension_numbers = #tpu.dot_dimension_numbers<[2], [2], [1], [1], [0, 0, 0, 1, 1, 1], [0], [0]>} : vector<2x8x32xbf16>, vector<2x8x32xbf16>, vector<2x8x8xf32> -> vector<2x8x8xf32>
    "tpu.trace_stop"() : () -> ()
    %cst_46 = arith.constant 0.176776692 : f32
    %103 = vector.broadcast %cst_46 : f32 to vector<2x8x8xf32>
    %104 = arith.mulf %102, %103 : vector<2x8x8xf32>
    %cst_47 = arith.constant 0.000000e+00 : f32
    %105 = vector.broadcast %cst_47 : f32 to vector<2x8x8xf32>
    %106 = arith.cmpf ogt, %3, %105 : vector<2x8x8xf32>
    %cst_48 = arith.constant -1.000000e+10 : f32
    %107 = vector.broadcast %cst_48 : f32 to vector<2x8x8xf32>
    %108 = arith.select %106, %104, %107 : vector<2x8x8xi1>, vector<2x8x8xf32>
    %cst_49 = arith.constant dense<0xFF800000> : vector<2x8xf32>
    %109 = vector.multi_reduction <maximumf>, %108, %cst_49 [2] : vector<2x8x8xf32> to vector<2x8xf32>
    %110 = vector.shape_cast %109 : vector<2x8xf32> to vector<2x8x1xf32>
    %111 = vector.broadcast %110 : vector<2x8x1xf32> to vector<2x8x8xf32>
    %112 = arith.subf %108, %111 : vector<2x8x8xf32>
    %113 = math.exp %112 : vector<2x8x8xf32>
    %cst_50 = arith.constant dense<0.000000e+00> : vector<2x8xf32>
    %114 = vector.multi_reduction <add>, %113, %cst_50 [2] : vector<2x8x8xf32> to vector<2x8xf32>
    %115 = vector.shape_cast %114 : vector<2x8xf32> to vector<2x8x1xf32>
    %116 = tpu.reciprocal %115 {approx = true} : vector<2x8x1xf32> -> vector<2x8x1xf32>
    %117 = vector.broadcast %116 : vector<2x8x1xf32> to vector<2x8x8xf32>
    %118 = arith.mulf %113, %117 : vector<2x8x8xf32>
    %119 = arith.truncf %118 : vector<2x8x8xf32> to vector<2x8x8xbf16>
    %120 = arith.truncf %99 : vector<2x8x32xf32> to vector<2x8x32xbf16>
    "tpu.trace_start"() <{level = 10 : i32, message = "bts,bsd->btd"}> : () -> ()
    %cst_51 = arith.constant dense<0.000000e+00> : vector<2x8x32xf32>
    %121 = tpu.matmul %119, %120, %cst_51 {dimension_numbers = #tpu.dot_dimension_numbers<[2], [1], [1], [2], [0, 0, 0, 1, 1, 2], [0], [0]>} : vector<2x8x8xbf16>, vector<2x8x32xbf16>, vector<2x8x32xf32> -> vector<2x8x32xf32>
    "tpu.trace_stop"() : () -> ()
    %122 = vector.shape_cast %121 : vector<2x8x32xf32> to vector<16x32xf32>
    %c224 = arith.constant 224 : index
    %c0_52 = arith.constant 0 : index
    %123 = vector.load %arg4[%c224, %c0_52] : memref<384x32xbf16, #tpu.memory_space<vmem>>, vector<32x32xbf16>
    %124 = arith.truncf %122 : vector<16x32xf32> to vector<16x32xbf16>
    %cst_53 = arith.constant dense<0.000000e+00> : vector<16x32xf32>
    %125 = tpu.matmul %124, %123, %cst_53 {dimension_numbers = #tpu.dot_dimension_numbers<[1], [0], [0], [1], [0, 0, 1, 1], [], []>} : vector<16x32xbf16>, vector<32x32xbf16>, vector<16x32xf32> -> vector<16x32xf32>
    %c7 = arith.constant 7 : index
    %c0_54 = arith.constant 0 : index
    %126 = vector.load %arg6[%c7, %c0_54] : memref<16x32xf32, #tpu.memory_space<vmem>>, vector<1x32xf32>
    %127 = vector.broadcast %126 : vector<1x32xf32> to vector<16x32xf32>
    %128 = arith.addf %125, %127 : vector<16x32xf32>
    %129 = arith.addf %78, %128 : vector<16x32xf32>
    %c11 = arith.constant 11 : index
    %c0_55 = arith.constant 0 : index
    %130 = vector.load %arg6[%c11, %c0_55] : memref<16x32xf32, #tpu.memory_space<vmem>>, vector<1x32xf32>
    %c12 = arith.constant 12 : index
    %c0_56 = arith.constant 0 : index
    %131 = vector.load %arg6[%c12, %c0_56] : memref<16x32xf32, #tpu.memory_space<vmem>>, vector<1x32xf32>
    %cst_57 = arith.constant dense<0.000000e+00> : vector<16xf32>
    %132 = vector.multi_reduction <add>, %129, %cst_57 [1] : vector<16x32xf32> to vector<16xf32>
    %133 = vector.shape_cast %132 : vector<16xf32> to vector<16x1xf32>
    %cst_58 = arith.constant 3.200000e+01 : f32
    %134 = vector.broadcast %cst_58 : f32 to vector<16x1xf32>
    %135 = arith.divf %133, %134 : vector<16x1xf32>
    %136 = vector.broadcast %135 : vector<16x1xf32> to vector<16x32xf32>
    %137 = arith.subf %129, %136 : vector<16x32xf32>
    %138 = arith.mulf %137, %137 : vector<16x32xf32>
    %cst_59 = arith.constant dense<0.000000e+00> : vector<16xf32>
    %139 = vector.multi_reduction <add>, %138, %cst_59 [1] : vector<16x32xf32> to vector<16xf32>
    %140 = vector.shape_cast %139 : vector<16xf32> to vector<16x1xf32>
    %cst_60 = arith.constant 3.200000e+01 : f32
    %141 = vector.broadcast %cst_60 : f32 to vector<16x1xf32>
    %142 = arith.divf %140, %141 : vector<16x1xf32>
    %143 = vector.broadcast %135 : vector<16x1xf32> to vector<16x32xf32>
    %144 = arith.subf %129, %143 : vector<16x32xf32>
    %cst_61 = arith.constant 9.99999974E-6 : f32
    %145 = vector.broadcast %cst_61 : f32 to vector<16x1xf32>
    %146 = arith.addf %142, %145 : vector<16x1xf32>
    %147 = math.rsqrt %146 : vector<16x1xf32>
    %148 = vector.broadcast %147 : vector<16x1xf32> to vector<16x32xf32>
    %149 = arith.mulf %144, %148 : vector<16x32xf32>
    %150 = vector.broadcast %130 : vector<1x32xf32> to vector<16x32xf32>
    %151 = arith.mulf %149, %150 : vector<16x32xf32>
    %152 = vector.broadcast %131 : vector<1x32xf32> to vector<16x32xf32>
    %153 = arith.addf %151, %152 : vector<16x32xf32>
    %c0_62 = arith.constant 0 : index
    %c0_63 = arith.constant 0 : index
    %154 = vector.load %arg5[%c0_62, %c0_63] : memref<64x128xbf16, #tpu.memory_space<vmem>>, vector<32x128xbf16>
    %c256 = arith.constant 256 : index
    %c0_64 = arith.constant 0 : index
    %155 = vector.load %arg4[%c256, %c0_64] : memref<384x32xbf16, #tpu.memory_space<vmem>>, vector<128x32xbf16>
    %156 = arith.truncf %153 : vector<16x32xf32> to vector<16x32xbf16>
    %cst_65 = arith.constant dense<0.000000e+00> : vector<16x128xf32>
    %157 = tpu.matmul %156, %154, %cst_65 {dimension_numbers = #tpu.dot_dimension_numbers<[1], [0], [0], [1], [0, 0, 1, 1], [], []>} : vector<16x32xbf16>, vector<32x128xbf16>, vector<16x128xf32> -> vector<16x128xf32>
    %c0_66 = arith.constant 0 : index
    %c0_67 = arith.constant 0 : index
    %158 = vector.load %arg7[%c0_66, %c0_67] : memref<8x128xf32, #tpu.memory_space<vmem>>, vector<1x128xf32>
    %159 = vector.broadcast %158 : vector<1x128xf32> to vector<16x128xf32>
    %160 = arith.addf %157, %159 : vector<16x128xf32>
    %cst_68 = arith.constant 0.000000e+00 : f32
    %161 = vector.broadcast %cst_68 : f32 to vector<16x128xf32>
    %162 = arith.maximumf %160, %161 : vector<16x128xf32>
    %163 = arith.truncf %162 : vector<16x128xf32> to vector<16x128xbf16>
    %cst_69 = arith.constant dense<0.000000e+00> : vector<16x32xf32>
    %164 = tpu.matmul %163, %155, %cst_69 {dimension_numbers = #tpu.dot_dimension_numbers<[1], [0], [0], [1], [0, 0, 1, 1], [], []>} : vector<16x128xbf16>, vector<128x32xbf16>, vector<16x32xf32> -> vector<16x32xf32>
    %c8 = arith.constant 8 : index
    %c0_70 = arith.constant 0 : index
    %165 = vector.load %arg6[%c8, %c0_70] : memref<16x32xf32, #tpu.memory_space<vmem>>, vector<1x32xf32>
    %166 = vector.broadcast %165 : vector<1x32xf32> to vector<16x32xf32>
    %167 = arith.addf %164, %166 : vector<16x32xf32>
    %168 = arith.addf %153, %167 : vector<16x32xf32>
    %c13 = arith.constant 13 : index
    %c0_71 = arith.constant 0 : index
    %169 = vector.load %arg6[%c13, %c0_71] : memref<16x32xf32, #tpu.memory_space<vmem>>, vector<1x32xf32>
    %c14 = arith.constant 14 : index
    %c0_72 = arith.constant 0 : index
    %170 = vector.load %arg6[%c14, %c0_72] : memref<16x32xf32, #tpu.memory_space<vmem>>, vector<1x32xf32>
    %cst_73 = arith.constant dense<0.000000e+00> : vector<16xf32>
    %171 = vector.multi_reduction <add>, %168, %cst_73 [1] : vector<16x32xf32> to vector<16xf32>
    %172 = vector.shape_cast %171 : vector<16xf32> to vector<16x1xf32>
    %cst_74 = arith.constant 3.200000e+01 : f32
    %173 = vector.broadcast %cst_74 : f32 to vector<16x1xf32>
    %174 = arith.divf %172, %173 : vector<16x1xf32>
    %175 = vector.broadcast %174 : vector<16x1xf32> to vector<16x32xf32>
    %176 = arith.subf %168, %175 : vector<16x32xf32>
    %177 = arith.mulf %176, %176 : vector<16x32xf32>
    %cst_75 = arith.constant dense<0.000000e+00> : vector<16xf32>
    %178 = vector.multi_reduction <add>, %177, %cst_75 [1] : vector<16x32xf32> to vector<16xf32>
    %179 = vector.shape_cast %178 : vector<16xf32> to vector<16x1xf32>
    %cst_76 = arith.constant 3.200000e+01 : f32
    %180 = vector.broadcast %cst_76 : f32 to vector<16x1xf32>
    %181 = arith.divf %179, %180 : vector<16x1xf32>
    %182 = vector.broadcast %174 : vector<16x1xf32> to vector<16x32xf32>
    %183 = arith.subf %168, %182 : vector<16x32xf32>
    %cst_77 = arith.constant 9.99999974E-6 : f32
    %184 = vector.broadcast %cst_77 : f32 to vector<16x1xf32>
    %185 = arith.addf %181, %184 : vector<16x1xf32>
    %186 = math.rsqrt %185 : vector<16x1xf32>
    %187 = vector.broadcast %186 : vector<16x1xf32> to vector<16x32xf32>
    %188 = arith.mulf %183, %187 : vector<16x32xf32>
    %189 = vector.broadcast %169 : vector<1x32xf32> to vector<16x32xf32>
    %190 = arith.mulf %188, %189 : vector<16x32xf32>
    %191 = vector.broadcast %170 : vector<1x32xf32> to vector<16x32xf32>
    %192 = arith.addf %190, %191 : vector<16x32xf32>
    %c32_78 = arith.constant 32 : index
    %c0_79 = arith.constant 0 : index
    %193 = vector.load %arg5[%c32_78, %c0_79] : memref<64x128xbf16, #tpu.memory_space<vmem>>, vector<32x128xbf16>
    %194 = arith.truncf %192 : vector<16x32xf32> to vector<16x32xbf16>
    %cst_80 = arith.constant dense<0.000000e+00> : vector<16x128xf32>
    %195 = tpu.matmul %194, %193, %cst_80 {dimension_numbers = #tpu.dot_dimension_numbers<[1], [0], [0], [1], [0, 0, 1, 1], [], []>} : vector<16x32xbf16>, vector<32x128xbf16>, vector<16x128xf32> -> vector<16x128xf32>
    %c1_81 = arith.constant 1 : index
    %c0_82 = arith.constant 0 : index
    %196 = vector.load %arg7[%c1_81, %c0_82] : memref<8x128xf32, #tpu.memory_space<vmem>>, vector<1x128xf32>
    %197 = vector.broadcast %196 : vector<1x128xf32> to vector<16x128xf32>
    %198 = arith.addf %195, %197 : vector<16x128xf32>
    %c0_83 = arith.constant 0 : index
    %c0_84 = arith.constant 0 : index
    %199 = vector.load %arg8[%c0_83, %c0_84] : memref<16x128xf32, #tpu.memory_space<vmem>>, vector<16x128xf32>
    tpu.vector_store %arg8[%c0_83, %c0_84], %198 {strides = array<i32>} : memref<16x128xf32, #tpu.memory_space<vmem>>, vector<16x128xf32>,
    return
  }
}

</mosaic_0001>

<bundles_post_ra>
// kernel: _decoder_forward.1
= control target key start
LH: loop header
LB: loop body
LE: loop exit
PB: predicated region body
PF: predicated region fallthrough
CT: control target
= control target key end

     0   :  { %v1737_v1 = vmov 0.0   ;;  %vm1738_vm0 = vmmov 0   ;;  %vm61_vm1 = vcmask 261120   ;;  %s2085_s0 = inlined_call_operand.vmem [shape: f32[16,32], index: 0, kind: input, shape index: {}]   ;;  %s2086_s1 = inlined_call_operand.vmem [shape: f32[16,32], index: 1, kind: input, shape index: {}]   ;;  %s2087_s2 = inlined_call_operand.vmem [shape: f32[2,8,8], index: 2, kind: input, shape index: {}]   ;;  %s2088_s3 = inlined_call_operand.vmem [shape: f32[2,8,8], index: 3, kind: input, shape index: {}]   ;;  %s2089_s4 = inlined_call_operand.vmem [shape: bf16[384,32], index: 4, kind: input, shape index: {}]   ;;  %s2090_s5 = inlined_call_operand.vmem [shape: bf16[64,128], index: 5, kind: input, shape index: {}]   ;;  %s2091_s6 = inlined_call_operand.vmem [shape: f32[16,32], index: 6, kind: input, shape index: {}]   ;;  %s2092_s7 = inlined_call_operand.vmem [shape: f32[8,128], index: 7, kind: input, shape index: {}]   ;;  %s2093_s8 = inlined_call_operand.hbm [shape: f32[16,128], index: 8, kind: output, shape index: {}]  }
   0x1   :  { %v1659_v0 = vld [vmem:[%s2089_s4 + $0x8] sm:$0xff]   ;;  %1506 = vmatprep.subr.bf16.mxu0 %v1737_v1  ;;  %v1660_v2 = vld [vmem:[%s2089_s4] sm:$0xff]   ;;  %1530 = vmatprep.subr.bf16.mxu1 %v1737_v1  ;;  %v1661_v5 = vld [vmem:[%s2089_s4 + $0x18] sm:$0xff]  }
   0x2   :  { %1507 = vmatpush3.bf16.msra.mxu0 %v1659_v0  ;;  %1510 = vmatprep.mubr.msk.bf16.mxu0 %vm1738_vm0, %v1737_v1  ;;  %v1800_v3 = vld [vmem:[%s2085_s0] sm:$0xff]  ;;  %v1805_v4 = vld [vmem:[%s2085_s0 + $0x8] sm:$0xff]  ;;  %v1662_v7 = vld [vmem:[%s2089_s4 + $0x10] sm:$0xff]  }
   0x3   :  { %1508 = vmatprep.subr.bf16.mxu0 %v1737_v1  ;;  %1532 = vmatprep.mubr.msk.bf16.mxu1 %vm1738_vm0, %v1737_v1  ;;  %v43_v6 = vpack.c.bf16 %v1805_v4, %v1800_v3 }
   0x6   :  { %1509 = vmatpush3.bf16.msra.mxu0 %v1660_v2 }
   0x7   :  { %1514 = vmatprep.subr.bf16.mxu0 %v1737_v1 }
   0x9   :  { %1511 = vmatmul.mubr.msk.bf16.vlgmr.msra.gmra.mxu0 %vm61_vm1, %v43_v6 }
   0xa   :  { %1515 = vmatpush3.bf16.msra.mxu0 %v1661_v5  ;;  %1518 = vmatprep.mubr.msk.bf16.mxu0 %vm1738_vm0, %v1737_v1 }
   0xb   :  { %1516 = vmatprep.subr.bf16.mxu0 %v1737_v1 }
   0xe   :  { %1517 = vmatpush3.bf16.msra.mxu0 %v1662_v7 }
   0xf   :  { %1522 = vmatprep.subr.bf16.mxu0 %v1737_v1 }
  0x11   :  { %1519 = vmatmul.mubr.msk.bf16.vlgmr.msra.gmra.mxu0 %vm61_vm1, %v43_v6 }
  0x12   :  { %1526 = vmatprep.mubr.msk.bf16.mxu0 %vm1738_vm0, %v1737_v1 }
  0x13   :  { %13 = vsyncpa [#allocation3], 0  ;;  %v1663_v8 = vld [vmem:[%s2089_s4 + $0x28] sm:$0xff]   ;;  %v1664_v9 = vld [vmem:[%s2089_s4 + $0x20] sm:$0xff]   ;;  %vm362_vm2 = vcmask 1043456   ;;  %vm332_vm4 = vcmask 64512  }
  0x14   :  { %1523 = vmatpush3.bf16.msra.mxu0 %v1663_v8  ;;  %v1392_v14 = vld [vmem:[%s2091_s6 + $0x1] ss:$0 sm:$0xff]  ;;  %v1388_v19 = vld [vmem:[%s2091_s6] ss:$0 sm:$0xff]  ;;  %v1396_v30 = vld [vmem:[%s2091_s6 + $0x2] ss:$0 sm:$0xff] }
  0x15   :  { %1524 = vmatprep.subr.bf16.mxu0 %v1737_v1  ;;  %v35_v41 = vld [vmem:[%s2087_s2] sm:$0xff]  ;;  %v36_v44 = vld [vmem:[%s2087_s2 + $0x8] sm:$0xff]  ;;  %s1739_s30 = smov [#allocation2]  }
  0x16   :  { %vm328_vm3 = vcmp.gt.f32.partialorder %v35_v41, 0.0  ;;  %vm329_vm5 = vcmp.gt.f32.partialorder %v36_v44, 0.0  ;;  %s1377_s9 = sshll.u32 %s1739_s30, 4  ;;  %s1378_s9 = int_to_ptr.vmem [resolvable:$true] %s1377_s9 }
  0x17   :  { %p1720_p1 = scmp.lt.s32.totalorder %s1378_s9, %s1378_s9 }
  0x18   :  { %1525 = vmatpush3.bf16.msra.mxu0 %v1664_v9 }
  0x19   :  { %1536 = vmatprep.subr.bf16.mxu0 %v1737_v1 }
  0x1b   :  { %1527 = vmatmul.mubr.msk.bf16.vlgmr.msra.gmra.mxu0 %vm61_vm1, %v43_v6 }
  0x1c   :  { %1538 = vmatprep.mubr.msk.bf16.mxu0 %vm1738_vm0, %v1737_v1 }
  0xc9   :  { %v99_v10 = vpop.f32.mrf.mxu0 }
  0xca   :  { %v100_v24 = vadd.f32 %v1388_v19, %v99_v10 }
  0xcb   :  { %v1512_v11 = vpop.f32.mrf.mxu0 }
  0xcc   :  { %v230_v27 = vpack.c.bf16 %v100_v24, %v100_v24 }
  0xcd   :  { %v102_v12 = vpop.f32.mrf.mxu0 }
  0xce   :  { %v103_v28 = vadd.f32 %v1388_v19, %v102_v12 }
  0xcf   :  { %v1513_v13 = vpop.f32.mrf.mxu0 }
  0xd0   :  { %v231_v29 = vpack.c.bf16 %v103_v28, %v103_v28 }
  0xd1   :  { %v161_v15 = vpop.f32.mrf.mxu0 }
  0xd2   :  { %v162_v16 = vadd.f32 %v1392_v14, %v161_v15  ;;  %v1666_v15 = vld [vmem:[%s2089_s4 + $0x30] sm:$0xff]  }
  0xd3   :  { %v1520_v17 = vpop.f32.mrf.mxu0 }
  0xd4   :  { %v232_v18 = vpack.c.bf16 %v162_v16, %v162_v16 }
  0xd5   :  { %v164_v20 = vpop.f32.mrf.mxu0 }
  0xd6   :  { %v165_v21 = vadd.f32 %v1392_v14, %v164_v20  ;;  %v238_v22 = vsel %vm61_vm1, %v232_v18, 0  ;;  %v1665_v14 = vld [vmem:[%s2089_s4 + $0x38] sm:$0xff]  }
  0xd7   :  { %v1521_v23 = vpop.f32.mrf.mxu0  ;;  %1531 = vmatpush3.bf16.xpose.msra.mxu1 %v238_v22 }
  0xd8   :  { %v233_v25 = vpack.c.bf16 %v165_v21, %v165_v21  ;;  %1542 = vmatprep.subr.bf16.mxu1 %v1737_v1 }
  0xda   :  { %v284_v26 = vsel %vm61_vm1, %v233_v25, 0  ;;  %v1404_v25 = vld [vmem:[%s2091_s6 + $0x3] ss:$0 sm:$0xff] }
  0xdb   :  { %1537 = vmatpush3.bf16.xpose.msra.mxu0 %v284_v26  ;;  %v223_v31 = vpop.f32.mrf.mxu0 }
  0xdc   :  { %1548 = vmatprep.subr.bf16.mxu0 %v1737_v1  ;;  %v224_v32 = vadd.f32 %v1396_v30, %v223_v31 }
  0xdd   :  { %v1528_v33 = vpop.f32.mrf.mxu0 }
  0xde   :  { %1533 = vmatmul.mubr.msk.bf16.vlgmr.msra.gmra.mxu1 %vm61_vm1, %v230_v27  ;;  %v357_v34 = vpack.c.bf16 %v224_v32, %v224_v32 }
  0xdf   :  { %1544 = vmatprep.mubr.msk.bf16.mxu1 %vm1738_vm0, %v1737_v1  ;;  %v226_v35 = vpop.f32.mrf.mxu0 }
  0xe0   :  { %v364_v36 = vsel %vm362_vm2, %v357_v34, 0  ;;  %v227_v37 = vadd.f32 %v1396_v30, %v226_v35 }
  0xe1   :  { %v1529_v38 = vpop.f32.mrf.mxu0  ;;  %1543 = vmatpush3.bf16.msra.mxu1 %v364_v36 }
  0xe2   :  { %1539 = vmatmul.mubr.msk.bf16.vlgmr.msra.gmra.mxu0 %vm61_vm1, %v231_v29  ;;  %v358_v39 = vpack.c.bf16 %v227_v37, %v227_v37  ;;  %1554 = vmatprep.subr.bf16.mxu1 %v1737_v1 }
  0xe3   :  { %1550 = vmatprep.mubr.msk.bf16.mxu0 %vm1738_vm0, %v1737_v1 }
  0xe4   :  { %v410_v40 = vsel %vm362_vm2, %v358_v39, 0 }
  0xe5   :  { %1549 = vmatpush3.bf16.msra.mxu0 %v410_v40 }
  0xe6   :  { %1562 = vmatprep.subr.bf16.mxu0 %v1737_v1 }
 0x19e   :  { %v274_v42 = vpop.f32.mrf.mxu1 }
 0x19f   :  { %v326_v43 = vmul.f32 0.17677669, %v274_v42 }
 0x1a0   :  { %v1534_v45 = vpop.f32.mrf.mxu1 }
 0x1a1   :  { %v330_v46 = vsel %vm328_vm3, %v326_v43, -1e+10  ;;  %v1668_v45 = vld [vmem:[%s2089_s4 + $0x50] sm:$0xff]  }
 0x1a2   :  { %v277_v47 = vpop.f32.mrf.mxu1  ;;  %v320_v48 = vpop.f32.mrf.mxu0  ;;  %v333_v49 = vsel %vm332_vm4, %v330_v46, -inf }
 0x1a3   :  { %v327_v50 = vmul.f32 0.17677669, %v320_v48  ;;  %334 = vmax.xlane.f32.xlu0 %v333_v49  ;;  %v34_v47 = vld [vmem:[%s2086_s1 + $0x8] sm:$0xff] }
 0x1a4   :  { %v1535_v51 = vpop.f32.mrf.mxu1  ;;  %v1540_v52 = vpop.f32.mrf.mxu0  ;;  %v1669_v49 = vld [vmem:[%s2089_s4 + $0x48] sm:$0xff]  }
 0x1a5   :  { %v331_v53 = vsel %vm329_vm5, %v327_v50, -1e+10  ;;  %v1670_v50 = vld [vmem:[%s2089_s4 + $0x40] sm:$0xff]  }
 0x1a6   :  { %v323_v54 = vpop.f32.mrf.mxu0  ;;  %v336_v55 = vsel %vm332_vm4, %v331_v53, -inf }
 0x1a7   :  { %337 = vmax.xlane.f32.xlu0 %v336_v55 }
 0x1a8   :  { %v1541_v56 = vpop.f32.mrf.mxu0 }
 0x22c   :  { %v335_v57 = vpop.xlane.xlu0 %334 }
 0x22d   :  { %v339_v58 = vsub.f32 %v330_v46, %v335_v57  ;;  %v33_v46 = vld [vmem:[%s2086_s1] sm:$0xff] }
 0x22e   :  { %v631_v48 = vpack.c.bf16 %v34_v47, %v33_v46 }
 0x22f   :  { %v341_v59 = vmul.f32 1.442695, %v339_v58 }
 0x230   :  { %v338_v60 = vpop.xlane.xlu0 %337 }
 0x231   :  { %1687 = vpow2.f32 %v341_v59  ;;  %v340_v61 = vsub.f32 %v331_v53, %v338_v60  ;;  %v1408_v59 = vld [vmem:[%s2091_s6 + $0x9] ss:$0 sm:$0xff] }
 0x233   :  { %v343_v62 = vmul.f32 1.442695, %v340_v61 }
 0x235   :  { %1689 = vpow2.f32 %v343_v62 }
 0x23e   :  { %v1688_v63 = vpop.eup %1687 }
 0x23f   :  { %v345_v0 = vsel %vm332_vm4, %v1688_v63, 0.0 }
 0x240   :  { %346 = vadd.xlane.f32.xlu1 %v345_v0 }
 0x242   :  { %v1690_v2 = vpop.eup %1689 }
 0x243   :  { %v348_v5 = vsel %vm332_vm4, %v1690_v2, 0.0 }
 0x244   :  { %349 = vadd.xlane.f32.xlu1 %v348_v5 }
 0x2c9   :  { %v347_v6 = vpop.xlane.xlu1 %346 }
 0x2ca   :  { %1691 = vrcp.f32 %v347_v6  ;;  %v1671_v6 = vld [vmem:[%s2089_s4 + $0x68] sm:$0xff]  }
 0x2cd   :  { %v350_v7 = vpop.xlane.xlu1 %349 }
 0x2ce   :  { %1693 = vrcp.f32 %v350_v7 }
 0x2d7   :  { %v1692_v8 = vpop.eup %1691 }
 0x2d8   :  { %v353_v9 = vmul.f32 %v1692_v8, %v1688_v63  ;;  %v1409_v63 = vld [vmem:[%s2091_s6 + $0xa] ss:$0 sm:$0xff]  ;;  %v1672_v8 = vld [vmem:[%s2089_s4 + $0x60] sm:$0xff]  }
 0x2da   :  { %v355_v10 = vpack.c.bf16 %v353_v9, %v353_v9  ;;  %v1414_v9 = vld [vmem:[%s2091_s6 + $0x5] ss:$0 sm:$0xff] }
 0x2db   :  { %v1694_v11 = vpop.eup %1693 }
 0x2dc   :  { %1545 = vmatmul.mubr.msk.bf16.vlgmr.msra.gmra.mxu1 %vm332_vm4, %v355_v10  ;;  %v354_v12 = vmul.f32 %v1694_v11, %v1690_v2 }
 0x2dd   :  { %1558 = vmatprep.mubr.msk.bf16.mxu1 %vm1738_vm0, %v1737_v1  ;;  %1555 = vmatpush3.bf16.msra.mxu1 %v1665_v14 }
 0x2de   :  { %v356_v13 = vpack.c.bf16 %v354_v12, %v354_v12  ;;  %1556 = vmatprep.subr.bf16.mxu1 %v1737_v1 }
 0x2e0   :  { %1551 = vmatmul.mubr.msk.bf16.vlgmr.msra.gmra.mxu0 %vm332_vm4, %v356_v13 }
 0x2e1   :  { %1566 = vmatprep.mubr.msk.bf16.mxu0 %vm1738_vm0, %v1737_v1  ;;  %1557 = vmatpush3.bf16.msra.mxu1 %v1666_v15 }
 0x2e2   :  { %1570 = vmatprep.subr.bf16.mxu1 %v1737_v1  ;;  %1563 = vmatpush3.bf16.msra.mxu0 %v1669_v49 }
 0x2e3   :  { %1564 = vmatprep.subr.bf16.mxu0 %v1737_v1 }
 0x2e6   :  { %1565 = vmatpush3.bf16.msra.mxu0 %v1670_v50 }
 0x2e7   :  { %1578 = vmatprep.subr.bf16.mxu0 %v1737_v1 }
 0x39c   :  { %v400_v16 = vpop.f32.mrf.mxu1 }
 0x39e   :  { %v1546_v17 = vpop.f32.mrf.mxu1 }
 0x3a0   :  { %v403_v18 = vpop.f32.mrf.mxu1  ;;  %v446_v19 = vpop.f32.mrf.mxu0 }
 0x3a1   :  { %v456_v20 = vpack.c.bf16 %v446_v19, %v400_v16 }
 0x3a2   :  { %v1547_v21 = vpop.f32.mrf.mxu1  ;;  %v1552_v22 = vpop.f32.mrf.mxu0 }
 0x3a3   :  { %1559 = vmatmul.mubr.msk.bf16.vlgmr.msra.gmra.mxu1 %vm61_vm1, %v456_v20  ;;  %v1410_v20 = vld [vmem:[%s2091_s6 + $0x4] ss:$0 sm:$0xff] }
 0x3a4   :  { %v449_v23 = vpop.f32.mrf.mxu0  ;;  %1574 = vmatprep.mubr.msk.bf16.mxu1 %vm1738_vm0, %v1737_v1 }
 0x3a6   :  { %v1553_v24 = vpop.f32.mrf.mxu0 }
 0x463   :  { %v511_v26 = vpop.f32.mrf.mxu1 }
 0x464   :  { %v512_v27 = vadd.f32 %v1404_v25, %v511_v26 }
 0x465   :  { %v1560_v28 = vpop.f32.mrf.mxu1 }
 0x466   :  { %v518_v29 = vadd.f32 %v512_v27, %v1800_v3  ;;  %v1418_v28 = vld [vmem:[%s2091_s6 + $0x6] ss:$0 sm:$0xff] }
 0x467   :  { %v514_v30 = vpop.f32.mrf.mxu1 }
 0x468   :  { %v515_v31 = vadd.f32 %v1404_v25, %v514_v30  ;;  %v522_v32 = vsel %vm61_vm1, %v518_v29, 0.0 }
 0x469   :  { %523 = vadd.xlane.f32.xlu0 %v522_v32  ;;  %v1561_v33 = vpop.f32.mrf.mxu1 }
 0x46a   :  { %v519_v34 = vadd.f32 %v515_v31, %v1805_v4  ;;  %v1667_v4 = vld [vmem:[%s2089_s4 + $0x58] sm:$0xff]  }
 0x46b   :  { %1571 = vmatpush3.bf16.msra.mxu1 %v1667_v4 }
 0x46c   :  { %v525_v35 = vsel %vm61_vm1, %v519_v34, 0.0  ;;  %1572 = vmatprep.subr.bf16.mxu1 %v1737_v1 }
 0x46d   :  { %526 = vadd.xlane.f32.xlu1 %v525_v35 }
 0x46f   :  { %1573 = vmatpush3.bf16.msra.mxu1 %v1668_v45 }
 0x470   :  { %1586 = vmatprep.subr.bf16.mxu1 %v1737_v1 }
 0x472   :  { %1575 = vmatmul.mubr.msk.bf16.vlgmr.msra.gmra.mxu1 %vm61_vm1, %v631_v48 }
 0x473   :  { %1588 = vmatprep.mubr.msk.bf16.mxu1 %vm1738_vm0, %v1737_v1 }
 0x4f2   :  { %v524_v36 = vpop.xlane.xlu0 %523 }
 0x4f3   :  { %v529_v37 = vmul.f32 0.03125, %v524_v36 }
 0x4f5   :  { %v531_v38 = vsub.f32 %v518_v29, %v529_v37 }
 0x4f6   :  { %v527_v39 = vpop.xlane.xlu1 %526 }
 0x4f7   :  { %v530_v40 = vmul.f32 0.03125, %v527_v39  ;;  %v533_v41 = vmul.f32 %v531_v38, %v531_v38 }
 0x4f9   :  { %v532_v42 = vsub.f32 %v519_v34, %v530_v40  ;;  %v535_v3 = vsel %vm61_vm1, %v533_v41, 0.0  ;;  %v37_v40 = vld [vmem:[%s2088_s3] sm:$0xff] }
 0x4fa   :  { %536 = vadd.xlane.f32.xlu0 %v535_v3  ;;  %vm853_vm6 = vcmp.gt.f32.partialorder %v37_v40, 0.0  ;;  %v38_v3 = vld [vmem:[%s2088_s3 + $0x8] sm:$0xff] }
 0x4fb   :  { %v534_v43 = vmul.f32 %v532_v42, %v532_v42  ;;  %vm854_vm7 = vcmp.gt.f32.partialorder %v38_v3, 0.0 }
 0x4fd   :  { %v538_v44 = vsel %vm61_vm1, %v534_v43, 0.0 }
 0x4fe   :  { %539 = vadd.xlane.f32.xlu1 %v538_v44 }
 0x532   :  { %v686_v10 = vpop.f32.mrf.mxu1 }
 0x533   :  { %v687_v11 = vadd.f32 %v1414_v9, %v686_v10 }
 0x534   :  { %v1576_v12 = vpop.f32.mrf.mxu1 }
 0x535   :  { %v757_v13 = vpack.c.bf16 %v687_v11, %v687_v11 }
 0x536   :  { %v689_v14 = vpop.f32.mrf.mxu1 }
 0x537   :  { %v763_v15 = vsel %vm61_vm1, %v757_v13, 0  ;;  %v690_v16 = vadd.f32 %v1414_v9, %v689_v14  ;;  %v1673_v13 = vld [vmem:[%s2089_s4 + $0x78] sm:$0xff]   ;;  %v1674_v14 = vld [vmem:[%s2089_s4 + $0x70] sm:$0xff]  }
 0x538   :  { %v1577_v17 = vpop.f32.mrf.mxu1  ;;  %1587 = vmatpush3.bf16.xpose.msra.mxu1 %v763_v15 }
 0x539   :  { %v758_v18 = vpack.c.bf16 %v690_v16, %v690_v16  ;;  %1598 = vmatprep.subr.bf16.mxu1 %v1737_v1 }
 0x53b   :  { %v809_v19 = vsel %vm61_vm1, %v758_v18, 0 }
 0x583   :  { %v537_v51 = vpop.xlane.xlu0 %536 }
 0x584   :  { %v541_v52 = vmul.f32 0.03125, %v537_v51 }
 0x586   :  { %v543_v53 = vadd.f32 1e-05, %v541_v52 }
 0x587   :  { %v540_v54 = vpop.xlane.xlu1 %539 }
 0x588   :  { %1695 = vrsqrt.f32 %v543_v53  ;;  %v542_v55 = vmul.f32 0.03125, %v540_v54 }
 0x58a   :  { %v544_v56 = vadd.f32 1e-05, %v542_v55 }
 0x58c   :  { %1697 = vrsqrt.f32 %v544_v56 }
 0x595   :  { %v1696_v57 = vpop.eup %1695 }
 0x596   :  { %v547_v58 = vmul.f32 %v1696_v57, %v531_v38 }
 0x598   :  { %v553_v62 = vmul.f32 %v1408_v59, %v547_v58 }
 0x599   :  { %v1698_v60 = vpop.eup %1697 }
 0x59a   :  { %v548_v61 = vmul.f32 %v1698_v60, %v532_v42  ;;  %v1928_v2 = vadd.f32 %v1409_v63, %v553_v62 }
 0x59c   :  { %v554_v0 = vmul.f32 %v1408_v59, %v548_v61 }
 0x59e   :  { %v1930_v5 = vadd.f32 %v1409_v63, %v554_v0 }
 0x5a0   :  { %v565_v7 = vpack.c.bf16 %v1930_v5, %v1928_v2 }
 0x5a2   :  { %1567 = vmatmul.mubr.msk.bf16.vlgmr.msra.gmra.mxu0 %vm61_vm1, %v565_v7 }
 0x5a3   :  { %1579 = vmatpush3.bf16.msra.mxu0 %v1671_v6  ;;  %1582 = vmatprep.mubr.msk.bf16.mxu0 %vm1738_vm0, %v1737_v1 }
 0x5a4   :  { %1580 = vmatprep.subr.bf16.mxu0 %v1737_v1 }
 0x5a7   :  { %1581 = vmatpush3.bf16.msra.mxu0 %v1672_v8 }
 0x5a8   :  { %1592 = vmatprep.subr.bf16.mxu0 %v1737_v1 }
 0x5aa   :  { %1583 = vmatmul.mubr.msk.bf16.vlgmr.msra.gmra.mxu0 %vm61_vm1, %v631_v48 }
 0x5ab   :  { %1594 = vmatprep.mubr.msk.bf16.mxu0 %vm1738_vm0, %v1737_v1  ;;  %1593 = vmatpush3.bf16.xpose.msra.mxu0 %v809_v19 }
 0x5ac   :  { %1604 = vmatprep.subr.bf16.mxu0 %v1737_v1 }
 0x662   :  { %v620_v21 = vpop.f32.mrf.mxu0 }
 0x663   :  { %v621_v22 = vadd.f32 %v1410_v20, %v620_v21 }
 0x664   :  { %v1568_v23 = vpop.f32.mrf.mxu0 }
 0x665   :  { %v755_v24 = vpack.c.bf16 %v621_v22, %v621_v22 }
 0x666   :  { %v623_v25 = vpop.f32.mrf.mxu0 }
 0x667   :  { %v624_v26 = vadd.f32 %v1410_v20, %v623_v25  ;;  %1589 = vmatmul.mubr.msk.bf16.vlgmr.msra.gmra.mxu1 %vm61_vm1, %v755_v24  ;;  %v1426_v24 = vld [vmem:[%s2091_s6 + $0x7] ss:$0 sm:$0xff] }
 0x668   :  { %v1569_v27 = vpop.f32.mrf.mxu0  ;;  %1600 = vmatprep.mubr.msk.bf16.mxu1 %vm1738_vm0, %v1737_v1 }
 0x669   :  { %v756_v29 = vpack.c.bf16 %v624_v26, %v624_v26 }
 0x66a   :  { %v748_v30 = vpop.f32.mrf.mxu0 }
 0x66b   :  { %1595 = vmatmul.mubr.msk.bf16.vlgmr.msra.gmra.mxu0 %vm61_vm1, %v756_v29  ;;  %v749_v31 = vadd.f32 %v1418_v28, %v748_v30 }
 0x66c   :  { %v1584_v32 = vpop.f32.mrf.mxu0  ;;  %1606 = vmatprep.mubr.msk.bf16.mxu0 %vm1738_vm0, %v1737_v1 }
 0x66d   :  { %v881_v33 = vpack.c.bf16 %v749_v31, %v749_v31 }
 0x66e   :  { %v751_v34 = vpop.f32.mrf.mxu0 }
 0x66f   :  { %v887_v35 = vsel %vm362_vm2, %v881_v33, 0  ;;  %v752_v36 = vadd.f32 %v1418_v28, %v751_v34 }
 0x670   :  { %v1585_v37 = vpop.f32.mrf.mxu0  ;;  %1599 = vmatpush3.bf16.msra.mxu1 %v887_v35 }
 0x671   :  { %v882_v38 = vpack.c.bf16 %v752_v36, %v752_v36  ;;  %1610 = vmatprep.subr.bf16.mxu1 %v1737_v1 }
 0x673   :  { %v933_v39 = vsel %vm362_vm2, %v882_v38, 0 }
 0x674   :  { %1605 = vmatpush3.bf16.msra.mxu0 %v933_v39 }
 0x675   :  { %1618 = vmatprep.subr.bf16.mxu0 %v1737_v1 }
 0x727   :  { %v799_v41 = vpop.f32.mrf.mxu1 }
 0x728   :  { %v851_v42 = vmul.f32 0.17677669, %v799_v41 }
 0x729   :  { %v1590_v43 = vpop.f32.mrf.mxu1 }
 0x72a   :  { %v855_v44 = vsel %vm853_vm6, %v851_v42, -1e+10  ;;  %v1676_v43 = vld [vmem:[%s2090_s5] sm:$0xff]  }
 0x72b   :  { %v802_v4 = vpop.f32.mrf.mxu1  ;;  %v845_v45 = vpop.f32.mrf.mxu0  ;;  %v857_v46 = vsel %vm332_vm4, %v855_v44, -inf }
 0x72c   :  { %v852_v47 = vmul.f32 0.17677669, %v845_v45  ;;  %858 = vmax.xlane.f32.xlu0 %v857_v46  ;;  %v1678_v4 = vld [vmem:[%s2089_s4 + $0xb0] sm:$0xff]   ;;  %v1679_v45 = vld [vmem:[%s2089_s4 + $0xa8] sm:$0xff]   ;;  %v1680_v46 = vld [vmem:[%s2089_s4 + $0xa0] sm:$0xff]  }
 0x72d   :  { %v1591_v48 = vpop.f32.mrf.mxu1  ;;  %v1596_v49 = vpop.f32.mrf.mxu0 }
 0x72e   :  { %v856_v50 = vsel %vm854_vm7, %v852_v47, -1e+10  ;;  %v1681_v47 = vld [vmem:[%s2089_s4 + $0x98] sm:$0xff]  }
 0x72f   :  { %v848_v51 = vpop.f32.mrf.mxu0  ;;  %v860_v52 = vsel %vm332_vm4, %v856_v50, -inf }
 0x730   :  { %861 = vmax.xlane.f32.xlu1 %v860_v52 }
 0x731   :  { %v1597_v53 = vpop.f32.mrf.mxu0 }
 0x7b5   :  { %v859_v54 = vpop.xlane.xlu0 %858 }
 0x7b6   :  { %v863_v55 = vsub.f32 %v855_v44, %v859_v54  ;;  %v1677_v44 = vld [vmem:[%s2089_s4 + $0xb8] sm:$0xff]  }
 0x7b8   :  { %v865_v56 = vmul.f32 1.442695, %v863_v55 }
 0x7b9   :  { %v862_v57 = vpop.xlane.xlu1 %861 }
 0x7ba   :  { %1699 = vpow2.f32 %v865_v56  ;;  %v864_v58 = vsub.f32 %v856_v50, %v862_v57  ;;  %v1430_v56 = vld [vmem:[%s2091_s6 + $0xb] ss:$0 sm:$0xff] }
 0x7bc   :  { %v867_v59 = vmul.f32 1.442695, %v864_v58 }
 0x7be   :  { %1701 = vpow2.f32 %v867_v59 }
 0x7c7   :  { %v1700_v60 = vpop.eup %1699 }
 0x7c8   :  { %v869_v61 = vsel %vm332_vm4, %v1700_v60, 0.0 }
 0x7c9   :  { %870 = vadd.xlane.f32.xlu0 %v869_v61 }
 0x7cb   :  { %v1702_v62 = vpop.eup %1701 }
 0x7cc   :  { %v872_v63 = vsel %vm332_vm4, %v1702_v62, 0.0 }
 0x7cd   :  { %873 = vadd.xlane.f32.xlu1 %v872_v63 }
 0x852   :  { %v871_v0 = vpop.xlane.xlu0 %870 }
 0x853   :  { %1703 = vrcp.f32 %v871_v0 }
 0x856   :  { %v874_v6 = vpop.xlane.xlu1 %873 }
 0x857   :  { %1705 = vrcp.f32 %v874_v6  ;;  %v1682_v6 = vld [vmem:[%s2089_s4 + $0x90] sm:$0xff]  }
 0x860   :  { %v1704_v7 = vpop.eup %1703 }
 0x861   :  { %v877_v8 = vmul.f32 %v1704_v7, %v1700_v60  ;;  %v1431_v60 = vld [vmem:[%s2091_s6 + $0xc] ss:$0 sm:$0xff] }
 0x862   :  { %v1683_v7 = vld [vmem:[%s2089_s4 + $0x88] sm:$0xff]  }
 0x863   :  { %v879_v9 = vpack.c.bf16 %v877_v8, %v877_v8  ;;  %v1684_v8 = vld [vmem:[%s2089_s4 + $0x80] sm:$0xff]  }
 0x864   :  { %v1706_v10 = vpop.eup %1705 }
 0x865   :  { %1601 = vmatmul.mubr.msk.bf16.vlgmr.msra.gmra.mxu1 %vm332_vm4, %v879_v9  ;;  %v878_v11 = vmul.f32 %v1706_v10, %v1702_v62  ;;  %v1432_v9 = vld [vmem:[%s2092_s7] ss:$0 sm:$0xff] }
 0x866   :  { %1614 = vmatprep.mubr.msk.bf16.mxu1 %vm1738_vm0, %v1737_v1  ;;  %1611 = vmatpush3.bf16.msra.mxu1 %v1673_v13 }
 0x867   :  { %v880_v12 = vpack.c.bf16 %v878_v11, %v878_v11  ;;  %1612 = vmatprep.subr.bf16.mxu1 %v1737_v1 }
 0x869   :  { %1607 = vmatmul.mubr.msk.bf16.vlgmr.msra.gmra.mxu0 %vm332_vm4, %v880_v12 }
 0x86a   :  { %1622 = vmatprep.mubr.msk.bf16.mxu0 %vm1738_vm0, %v1737_v1  ;;  %1613 = vmatpush3.bf16.msra.mxu1 %v1674_v14 }
 0x86b   :  { %1626 = vmatprep.subr.bf16.mxu1 %v1737_v1 }
 0x925   :  { %v923_v15 = vpop.f32.mrf.mxu1 }
 0x927   :  { %v1602_v16 = vpop.f32.mrf.mxu1 }
 0x929   :  { %v926_v17 = vpop.f32.mrf.mxu1  ;;  %v969_v18 = vpop.f32.mrf.mxu0 }
 0x92a   :  { %v979_v19 = vpack.c.bf16 %v969_v18, %v923_v15 }
 0x92b   :  { %v1603_v20 = vpop.f32.mrf.mxu1  ;;  %v1608_v21 = vpop.f32.mrf.mxu0 }
 0x92c   :  { %1615 = vmatmul.mubr.msk.bf16.vlgmr.msra.gmra.mxu1 %vm61_vm1, %v979_v19  ;;  %v1436_v19 = vld [vmem:[%s2091_s6 + $0x8] ss:$0 sm:$0xff] }
 0x92d   :  { %v972_v22 = vpop.f32.mrf.mxu0  ;;  %1642 = vmatprep.mubr.msk.bf16.mxu1 %vm1738_vm0, %v1737_v1  ;;  %1627 = vmatpush3.bf16.msra.mxu1 %v1677_v44 }
 0x92e   :  { %1628 = vmatprep.subr.bf16.mxu1 %v1737_v1 }
 0x92f   :  { %v1609_v23 = vpop.f32.mrf.mxu0 }
 0x931   :  { %1629 = vmatpush3.bf16.msra.mxu1 %v1678_v4 }
 0x932   :  { %1630 = vmatprep.subr.bf16.mxu1 %v1737_v1 }
 0x935   :  { %1631 = vmatpush3.bf16.msra.mxu1 %v1679_v45 }
 0x936   :  { %1632 = vmatprep.subr.bf16.mxu1 %v1737_v1 }
 0x939   :  { %1633 = vmatpush3.bf16.msra.mxu1 %v1680_v46  ;;  %v1445_v46 = vld [vmem:[%s2091_s6 + $0xd] ss:$0 sm:$0xff] }
 0x93a   :  { %1634 = vmatprep.subr.bf16.mxu1 %v1737_v1 }
 0x93d   :  { %1635 = vmatpush3.bf16.msra.mxu1 %v1681_v47 }
 0x93e   :  { %1636 = vmatprep.subr.bf16.mxu1 %v1737_v1 }
 0x941   :  { %1637 = vmatpush3.bf16.msra.mxu1 %v1682_v6 }
 0x942   :  { %1638 = vmatprep.subr.bf16.mxu1 %v1737_v1 }
 0x945   :  { %1639 = vmatpush3.bf16.msra.mxu1 %v1683_v7 }
 0x946   :  { %1640 = vmatprep.subr.bf16.mxu1 %v1737_v1 }
 0x949   :  { %1641 = vmatpush3.bf16.msra.mxu1 %v1684_v8 }
 0x9ec   :  { %v1034_v25 = vpop.f32.mrf.mxu1 }
 0x9ed   :  { %v1035_v26 = vadd.f32 %v1426_v24, %v1034_v25 }
 0x9ee   :  { %v1616_v27 = vpop.f32.mrf.mxu1 }
 0x9ef   :  { %v1041_v28 = vadd.f32 %v1035_v26, %v1928_v2 }
 0x9f0   :  { %v1037_v29 = vpop.f32.mrf.mxu1 }
 0x9f1   :  { %v1038_v30 = vadd.f32 %v1426_v24, %v1037_v29  ;;  %v1045_v31 = vsel %vm61_vm1, %v1041_v28, 0.0 }
 0x9f2   :  { %1046 = vadd.xlane.f32.xlu0 %v1045_v31  ;;  %v1617_v32 = vpop.f32.mrf.mxu1 }
 0x9f3   :  { %v1042_v33 = vadd.f32 %v1038_v30, %v1930_v5  ;;  %v1675_v5 = vld [vmem:[%s2090_s5 + $0x8] sm:$0xff]  }
 0x9f4   :  { %1619 = vmatpush3.bf16.msra.mxu0 %v1675_v5 }
 0x9f5   :  { %v1048_v34 = vsel %vm61_vm1, %v1042_v33, 0.0  ;;  %1620 = vmatprep.subr.bf16.mxu0 %v1737_v1 }
 0x9f6   :  { %1049 = vadd.xlane.f32.xlu1 %v1048_v34 }
 0x9f8   :  { %1621 = vmatpush3.bf16.msra.mxu0 %v1676_v43 }
 0x9f9   :  { %1646 = vmatprep.subr.bf16.mxu0 %v1737_v1 }
 0xa7b   :  { %v1047_v35 = vpop.xlane.xlu0 %1046 }
 0xa7c   :  { %v1051_v36 = vmul.f32 0.03125, %v1047_v35 }
 0xa7e   :  { %v1053_v37 = vsub.f32 %v1041_v28, %v1051_v36 }
 0xa7f   :  { %v1050_v38 = vpop.xlane.xlu1 %1049 }
 0xa80   :  { %v1052_v39 = vmul.f32 0.03125, %v1050_v38  ;;  %v1055_v40 = vmul.f32 %v1053_v37, %v1053_v37 }
 0xa82   :  { %v1054_v41 = vsub.f32 %v1042_v33, %v1052_v39  ;;  %v1057_v2 = vsel %vm61_vm1, %v1055_v40, 0.0  ;;  %v1685_v40 = vld [vmem:[%s2090_s5 + $0x18] sm:$0xff]  }
 0xa83   :  { %1058 = vadd.xlane.f32.xlu0 %v1057_v2 }
 0xa84   :  { %v1056_v42 = vmul.f32 %v1054_v41, %v1054_v41 }
 0xa86   :  { %v1060_v3 = vsel %vm61_vm1, %v1056_v42, 0.0 }
 0xa87   :  { %1061 = vadd.xlane.f32.xlu1 %v1060_v3 }
 0xb0c   :  { %v1059_v48 = vpop.xlane.xlu0 %1058 }
 0xb0d   :  { %v1063_v49 = vmul.f32 0.03125, %v1059_v48 }
 0xb0f   :  { %v1065_v50 = vadd.f32 1e-05, %v1063_v49 }
 0xb10   :  { %v1062_v51 = vpop.xlane.xlu1 %1061 }
 0xb11   :  { %1707 = vrsqrt.f32 %v1065_v50  ;;  %v1064_v52 = vmul.f32 0.03125, %v1062_v51 }
 0xb13   :  { %v1066_v53 = vadd.f32 1e-05, %v1064_v52 }
 0xb15   :  { %1709 = vrsqrt.f32 %v1066_v53 }
 0xb1e   :  { %v1708_v54 = vpop.eup %1707 }
 0xb1f   :  { %v1069_v55 = vmul.f32 %v1708_v54, %v1053_v37  ;;  %v1447_v54 = vld [vmem:[%s2092_s7 + $0x1] ss:$0 sm:$0xff] }
 0xb21   :  { %v1075_v59 = vmul.f32 %v1430_v56, %v1069_v55 }
 0xb22   :  { %v1710_v57 = vpop.eup %1709 }
 0xb23   :  { %v1070_v58 = vmul.f32 %v1710_v57, %v1054_v41  ;;  %v1081_v62 = vadd.f32 %v1431_v60, %v1075_v59  ;;  %v1686_v41 = vld [vmem:[%s2090_s5 + $0x10] sm:$0xff]  }
 0xb25   :  { %v1076_v61 = vmul.f32 %v1430_v56, %v1070_v58 }
 0xb27   :  { %v1082_v63 = vadd.f32 %v1431_v60, %v1076_v61 }
 0xb29   :  { %v1103_v0 = vpack.c.bf16 %v1082_v63, %v1081_v62 }
 0xb2b   :  { %1623 = vmatmul.mubr.msk.bf16.vlgmr.msra.gmra.mxu0 %vm61_vm1, %v1103_v0 }
 0xb2c   :  { %1650 = vmatprep.mubr.msk.bf16.mxu0 %vm1738_vm0, %v1737_v1  ;;  %1647 = vmatpush3.bf16.msra.mxu0 %v1685_v40 }
 0xb2d   :  { %1648 = vmatprep.subr.bf16.mxu0 %v1737_v1  ;;  %v1446_v1 = vld [vmem:[%s2091_s6 + $0xe] ss:$0 sm:$0xff]  ;;  %s1715_s6 = scalar_lea.vmem %s1378_s9, 256 }
 0xb2e   :  { %p1716_p0 = scmp.ne.s32.totalorder %s1378_s9, %s1715_s6  ;;  %p1721_p2 = scmp.lt.s32.totalorder %s1715_s6, %s1715_s6 }
 0xb30   :  { %1649 = vmatpush3.bf16.msra.mxu0 %v1686_v41  ;;  %p1722_p3 = por %p1721_p2, %p1720_p1 }
 0xb32   :  { %p1723_p4 = pnand %p1722_p3, %p1716_p0 }
 0xbeb   :  { %v1158_v10 = vpop.f32.mrf.mxu0 }
 0xbec   :  { %v1159_v12 = vadd.f32 %v1432_v9, %v1158_v10 }
 0xbed   :  { %v1624_v11 = vpop.f32.mrf.mxu0 }
 0xbee   :  { %v1165_v16 = vmax.f32 %v1159_v12, 0.0 }
 0xbef   :  { %v1161_v13 = vpop.f32.mrf.mxu0 }
 0xbf0   :  { %v1162_v14 = vadd.f32 %v1432_v9, %v1161_v13 }
 0xbf1   :  { %v1625_v15 = vpop.f32.mrf.mxu0 }
 0xbf2   :  { %v1166_v17 = vmax.f32 %v1162_v14, 0.0 }
 0xbf4   :  { %v1167_v18 = vpack.c.bf16 %v1166_v17, %v1165_v16 }
 0xbf6   :  { %1643 = vmatmul.mubr.bf16.vlgmr.msra.gmra.mxu1 %v1167_v18 }
 0xcb6   :  { %v1255_v20 = vpop.f32.mrf.mxu1 }
 0xcb7   :  { %v1256_v21 = vadd.f32 %v1436_v19, %v1255_v20 }
 0xcb8   :  { %v1644_v22 = vpop.f32.mrf.mxu1 }
 0xcb9   :  { %v1262_v23 = vadd.f32 %v1256_v21, %v1081_v62 }
 0xcba   :  { %v1258_v24 = vpop.f32.mrf.mxu1 }
 0xcbb   :  { %v1259_v25 = vadd.f32 %v1436_v19, %v1258_v24  ;;  %v1266_v26 = vsel %vm61_vm1, %v1262_v23, 0.0 }
 0xcbc   :  { %1267 = vadd.xlane.f32.xlu0 %v1266_v26  ;;  %v1645_v27 = vpop.f32.mrf.mxu1 }
 0xcbd   :  { %v1263_v28 = vadd.f32 %v1259_v25, %v1082_v63 }
 0xcbf   :  { %v1269_v29 = vsel %vm61_vm1, %v1263_v28, 0.0 }
 0xcc0   :  { %1270 = vadd.xlane.f32.xlu1 %v1269_v29 }
 0xd45   :  { %v1268_v30 = vpop.xlane.xlu0 %1267 }
 0xd46   :  { %v1272_v31 = vmul.f32 0.03125, %v1268_v30 }
 0xd48   :  { %v1274_v32 = vsub.f32 %v1262_v23, %v1272_v31 }
 0xd49   :  { %v1271_v33 = vpop.xlane.xlu1 %1270 }
 0xd4a   :  { %v1273_v34 = vmul.f32 0.03125, %v1271_v33  ;;  %v1276_v35 = vmul.f32 %v1274_v32, %v1274_v32 }
 0xd4c   :  { %v1275_v36 = vsub.f32 %v1263_v28, %v1273_v34  ;;  %v1278_v37 = vsel %vm61_vm1, %v1276_v35, 0.0 }
 0xd4d   :  { %1279 = vadd.xlane.f32.xlu0 %v1278_v37 }
 0xd4e   :  { %v1277_v38 = vmul.f32 %v1275_v36, %v1275_v36 }
 0xd50   :  { %v1281_v39 = vsel %vm61_vm1, %v1277_v38, 0.0 }
 0xd51   :  { %1282 = vadd.xlane.f32.xlu1 %v1281_v39 }
 0xdd6   :  { %v1280_v2 = vpop.xlane.xlu0 %1279 }
 0xdd7   :  { %v1284_v42 = vmul.f32 0.03125, %v1280_v2 }
 0xdd9   :  { %v1286_v3 = vadd.f32 1e-05, %v1284_v42 }
 0xdda   :  { %v1283_v5 = vpop.xlane.xlu1 %1282 }
 0xddb   :  { %1711 = vrsqrt.f32 %v1286_v3  ;;  %v1285_v43 = vmul.f32 0.03125, %v1283_v5 }
 0xddd   :  { %v1287_v44 = vadd.f32 1e-05, %v1285_v43 }
 0xddf   :  { %1713 = vrsqrt.f32 %v1287_v44 }
 0xde8   :  { %v1712_v4 = vpop.eup %1711 }
 0xde9   :  { %v1290_v45 = vmul.f32 %v1712_v4, %v1274_v32 }
 0xdeb   :  { %v1296_v49 = vmul.f32 %v1445_v46, %v1290_v45 }
 0xdec   :  { %v1714_v47 = vpop.eup %1713 }
 0xded   :  { %v1291_v48 = vmul.f32 %v1714_v47, %v1275_v36  ;;  %v1302_v51 = vadd.f32 %v1446_v1, %v1296_v49 }
 0xdef   :  { %v1297_v50 = vmul.f32 %v1445_v46, %v1291_v48 }
 0xdf1   :  { %v1303_v52 = vadd.f32 %v1446_v1, %v1297_v50 }
 0xdf3   :  { %v1308_v53 = vpack.c.bf16 %v1303_v52, %v1302_v51 }
 0xdf5   :  { %1651 = vmatmul.mubr.msk.bf16.vlgmr.msra.gmra.mxu0 %vm61_vm1, %v1308_v53 }
 0xeb5   :  { %v1363_v55 = vpop.f32.mrf.mxu0 }
 0xeb6   :  { %v1364_v56 = vadd.f32 %v1447_v54, %v1363_v55 }
 0xeb7   :  { %v1652_v57 = vpop.f32.mrf.mxu0 }
 0xeb8   :  { %1370 = vst [vmem:[#allocation2] sm:$0xff] %v1364_v56 }
 0xeb9   :  { %v1366_v58 = vpop.f32.mrf.mxu0 }
 0xeba   :  { %v1367_v59 = vadd.f32 %v1447_v54, %v1366_v58 }
 0xebb   :  { %v1653_v60 = vpop.f32.mrf.mxu0 }
 0xebc   :  { %1371 = vst [vmem:[#allocation2 + $0x8] sm:$0xff] %v1367_v59 }
 0xebd   :  { %1726 = shalt.err (!%p1723_p4)
}
 0xebe   :  { %s1740_s10 = smov 128   ;;  %s1741_s7 = smov 8  }
 0xebf   :  { %1383 = dma.vmem_to_hbm [thread:$0]  %s1378_s9, 256, %s2093_s8, [#allocation3], %s1740_s10, %s1740_s10, %s1741_s7  }
 0xec0   :  { %1735 = dma.done.wait [#allocation3], 256  }
 0xec1   :  { %1736 = vsyncadd [#allocation3], 4294967040 }
 0xec2   :  { %1387 = vsyncpa [#allocation3], 1 }

</bundles_post_ra>
